<compile_context>
chip_gen: v7x
topology: tpu7x:2x2x1
jax: 0.10.0
libtpu: 0.0.40
codegen_flags: <defaults>
</compile_context>

<pallas_src>
import numpy as np
import jax
import jax.numpy as jnp
from jax.experimental import pallas as pl
from jax.experimental.pallas import tpu as pltpu

# VMEM budget used when choosing the batch tile (conservative so it also fits
# v5e's small scoped default once we raise vmem_limit_bytes).
_VMEM_BUDGET_BYTES = 24 * 1024 * 1024
_VMEM_LIMIT_BYTES = 40 * 1024 * 1024  # < v7x 64 MiB physical, fine on v5e/v6e.


def _round_up(x, m):
    return ((x + m - 1) // m) * m


def _pick_block_bs(bs, in_dim, out_pad, x_itemsize, sel_itemsize):
    """Pick a sublane-aligned batch tile that fits the VMEM budget and yields
    >= 2 grid steps whenever the batch is big enough (v7x dual-TC)."""
    # Grid-invariant residents: sel (single-buffered, bf16) + mask row
    # (padded to 8 sublanes).
    fixed = in_dim * out_pad * sel_itemsize + 8 * in_dim * x_itemsize
    # Per-row residents: x, d_full, d blocks, each double-buffered.
    per_row = 2 * x_itemsize * (2 * in_dim + out_pad)
    if _VMEM_BUDGET_BYTES > fixed:
        cap = (_VMEM_BUDGET_BYTES - fixed) // per_row
    else:
        cap = 8
    cap = max(8, (cap // 8) * 8)

    block_bs = min(512, _round_up(bs, 8), cap)
    # Ensure at least 2 grid steps when the batch permits, so both v7x
    # TensorCores get work under dimension_semantics=("parallel",).
    if bs >= 16 and pl.cdiv(bs, block_bs) < 2:
        block_bs = max(8, _round_up(pl.cdiv(bs, 2), 8))
    return block_bs


def _metric_kernel(x_ref, sel_ref, mask_ref, d_ref, dfull_ref):
    x = x_ref[...]
    # d = x @ measure.T, realized as x @ sel where sel = measure.T zero-padded
    # to a lane-dense (multiple-of-128) column count.  sel is stored bf16
    # (entries are exactly 0/1); upcast on the VPU, accumulate in f32 -> exact.
    sel = sel_ref[...].astype(jnp.float32)
    d_ref[...] = jnp.dot(
        x.astype(jnp.float32), sel, preferred_element_type=jnp.float32
    ).astype(d_ref.dtype)
    # d_fullmeasurement = x @ fullmeasure.T = x * diag(fullmeasure).
    # Pure VPU elementwise multiply; no (in_dim, in_dim) operand is ever moved.
    dfull_ref[...] = (x * mask_ref[...]).astype(dfull_ref.dtype)


def metric_forward(x, sel_padded, mask_row, out_dim, *, return_padded=False):
    """x: (bs, in_dim); sel_padded: (in_dim, out_pad) = measure.T zero-padded
    (bf16); mask_row: (1, in_dim) = diag(fullmeasure).

    Returns (d, d_fullmeasurement) = (bs, out_dim), (bs, in_dim).
    With return_padded=True, d keeps its 128-padded column count (zero cols),
    avoiding the extra XLA slice copy when the consumer tolerates padding."""
    bs, in_dim = x.shape
    out_pad = sel_padded.shape[1]
    x_item = jnp.dtype(x.dtype).itemsize
    sel_item = jnp.dtype(sel_padded.dtype).itemsize

    block_bs = _pick_block_bs(bs, in_dim, out_pad, x_item, sel_item)
    grid = (pl.cdiv(bs, block_bs),)

    flops = 2 * bs * in_dim * out_pad + bs * in_dim
    bytes_accessed = (
        x_item * bs * in_dim            # x
        + sel_item * in_dim * out_pad   # sel (bf16)
        + x_item * in_dim               # mask row
        + x_item * bs * out_pad         # d (padded)
        + x_item * bs * in_dim          # d_fullmeasurement
    )

    d_pad, d_full = pl.pallas_call(
        _metric_kernel,
        grid=grid,
        out_shape=(
            jax.ShapeDtypeStruct((bs, out_pad), x.dtype),
            jax.ShapeDtypeStruct((bs, in_dim), x.dtype),
        ),
        in_specs=[
            pl.BlockSpec((block_bs, in_dim), lambda i: (i, 0)),
            # Grid-invariant operands: single-buffer them to halve residency.
            pl.BlockSpec((in_dim, out_pad), lambda i: (0, 0),
                         pipeline_mode=pl.Buffered(1)),
            pl.BlockSpec((1, in_dim), lambda i: (0, 0),
                         pipeline_mode=pl.Buffered(1)),
        ],
        out_specs=(
            pl.BlockSpec((block_bs, out_pad), lambda i: (i, 0)),
            pl.BlockSpec((block_bs, in_dim), lambda i: (i, 0)),
        ),
        compiler_params=pltpu.CompilerParams(
            dimension_semantics=("parallel",),
            vmem_limit_bytes=_VMEM_LIMIT_BYTES,
        ),
        cost_estimate=pl.CostEstimate(
            flops=int(flops), transcendentals=0,
            bytes_accessed=int(bytes_accessed),
        ),
    )(x, sel_padded, mask_row)

    if return_padded:
        return d_pad, d_full
    # Strip the lane padding added for dense stores (separate small XLA copy;
    # skip it via return_padded=True if the consumer accepts padded d).
    return d_pad[:, :out_dim], d_full


def build_metric_params(in_dim, out_dim, seed=0):
    """Deterministic construction mirroring Metric.__init__.

    Returns the compact operands the kernel uses (sel_padded bf16, mask_row)
    plus the dense measure / fullmeasure matrices for reference checking."""
    rng = np.random.default_rng(seed)
    unsample = rng.choice(in_dim, in_dim - out_dim, replace=False)
    keep = np.setdiff1d(np.arange(in_dim), unsample)   # sorted, matches np.delete

    # Compact structured operands (what the kernel consumes).
    mask = np.zeros((in_dim,), np.float32)
    mask[keep] = 1.0
    out_pad = _round_up(out_dim, 128)
    sel = np.zeros((in_dim, out_pad), np.float32)      # = measure.T, zero-padded
    sel[keep, np.arange(out_dim)] = 1.0

    # Dense matrices exactly as the PyTorch module builds them (used only for
    # the correctness reference below).
    eye = np.eye(in_dim, dtype=np.float32)
    measure = np.delete(eye, unsample, axis=0)         # (out_dim, in_dim)
    eye_full = np.eye(in_dim, dtype=np.float32)
    eye_full[unsample, :] = 0.0
    fullmeasure = eye_full                             # (in_dim, in_dim)

    return (
        jnp.asarray(sel, dtype=jnp.bfloat16),          # 0/1 exact in bf16
        jnp.asarray(mask).reshape(1, in_dim),
        jnp.asarray(measure),
        jnp.asarray(fullmeasure),
    )


if __name__ == "__main__":
    # Small shapes consistent with the module (in_dim = spatial**2, bs=64 as
    # in the module default -> yields a 2-step parallel batch grid).
    bs, spatial, out_dim = 64, 16, 32
    in_dim = spatial * spatial

    sel_padded, mask_row, measure, fullmeasure = build_metric_params(
        in_dim, out_dim, seed=0
    )

    key = jax.random.PRNGKey(0)
    x = jax.random.normal(key, (bs, in_dim), dtype=jnp.float32)

    d, d_full = metric_forward(x, sel_padded, mask_row, out_dim)
    d, d_full = jax.block_until_ready((d, d_full))

    # Reference check against the dense formulation (same math as the PyTorch
    # per-sample torch.mm loop).
    d_ref = x @ measure.T
    d_full_ref = x @ fullmeasure.T
    assert d.shape == (bs, out_dim) and d_full.shape == (bs, in_dim)
    assert jnp.allclose(d, d_ref, atol=1e-6)
    assert jnp.allclose(d_full, d_full_ref, atol=1e-6)

    print("KERNEL_OK")
</pallas_src>

<mosaic_0001>
module attributes {stable_mosaic.version = 11 : i64} {
  func.func @_metric_kernel(%arg0: i32, %arg1: memref<32x256xf32, #tpu.memory_space<vmem>>, %arg2: memref<256x128xbf16, #tpu.memory_space<vmem>>, %arg3: memref<1x256xf32, #tpu.memory_space<vmem>>, %arg4: memref<32x128xf32, #tpu.memory_space<vmem>>, %arg5: memref<32x256xf32, #tpu.memory_space<vmem>>) attributes {dimension_semantics = [#tpu.dimension_semantics<parallel>], iteration_bounds = array<i64: 2>, scalar_prefetch = 0 : i64, scratch_operands = 0 : i64, tpu.core_type = #tpu.core_type<tc>, window_params = [{transform_indices = @transform_0, window_bounds = array<i64: 32, 256>}, {pipeline_mode = #tpu.pipeline_mode<synchronous>, transform_indices = @transform_1, window_bounds = array<i64: 256, 128>}, {pipeline_mode = #tpu.pipeline_mode<synchronous>, transform_indices = @transform_2, window_bounds = array<i64: 1, 256>}, {transform_indices = @transform_3, window_bounds = array<i64: 32, 128>}, {transform_indices = @transform_4, window_bounds = array<i64: 32, 256>}]} {
    %c0 = arith.constant 0 : index
    %c0_0 = arith.constant 0 : index
    %0 = vector.load %arg1[%c0, %c0_0] : memref<32x256xf32, #tpu.memory_space<vmem>>, vector<32x256xf32>
    %c0_1 = arith.constant 0 : index
    %c0_2 = arith.constant 0 : index
    %1 = vector.load %arg2[%c0_1, %c0_2] : memref<256x128xbf16, #tpu.memory_space<vmem>>, vector<256x128xbf16>
    %2 = arith.extf %1 : vector<256x128xbf16> to vector<256x128xf32>
    %cst = arith.constant dense<0.000000e+00> : vector<32x128xf32>
    %3 = tpu.matmul %0, %2, %cst {dimension_numbers = #tpu.dot_dimension_numbers<[1], [0], [0], [1], [0, 0, 1, 1], [], []>} : vector<32x256xf32>, vector<256x128xf32>, vector<32x128xf32> -> vector<32x128xf32>
    %c0_3 = arith.constant 0 : index
    %c0_4 = arith.constant 0 : index
    %4 = vector.load %arg4[%c0_3, %c0_4] : memref<32x128xf32, #tpu.memory_space<vmem>>, vector<32x128xf32>
    tpu.vector_store %arg4[%c0_3, %c0_4], %3 {strides = array<i32>} : memref<32x128xf32, #tpu.memory_space<vmem>>, vector<32x128xf32>,
    %c0_5 = arith.constant 0 : index
    %c0_6 = arith.constant 0 : index
    %5 = vector.load %arg3[%c0_5, %c0_6] : memref<1x256xf32, #tpu.memory_space<vmem>>, vector<1x256xf32>
    %6 = vector.broadcast %5 : vector<1x256xf32> to vector<32x256xf32>
    %7 = arith.mulf %0, %6 : vector<32x256xf32>
    %c0_7 = arith.constant 0 : index
    %c0_8 = arith.constant 0 : index
    %8 = vector.load %arg5[%c0_7, %c0_8] : memref<32x256xf32, #tpu.memory_space<vmem>>, vector<32x256xf32>
    tpu.vector_store %arg5[%c0_7, %c0_8], %7 {strides = array<i32>} : memref<32x256xf32, #tpu.memory_space<vmem>>, vector<32x256xf32>,
    return
  }
  func.func @transform_0(%arg0: i32) -> (i32, i32) {
    %c0_i32 = arith.constant 0 : i32
    %c0_i32_0 = arith.constant 0 : i32
    return %arg0, %c0_i32 : i32, i32
  }
  func.func @transform_1(%arg0: i32) -> (i32, i32) {
    %c0_i32 = arith.constant 0 : i32
    %c0_i32_0 = arith.constant 0 : i32
    %c0_i32_1 = arith.constant 0 : i32
    return %c0_i32, %c0_i32_0 : i32, i32
  }
  func.func @transform_2(%arg0: i32) -> (i32, i32) {
    %c0_i32 = arith.constant 0 : i32
    %c0_i32_0 = arith.constant 0 : i32
    %c0_i32_1 = arith.constant 0 : i32
    return %c0_i32, %c0_i32_0 : i32, i32
  }
  func.func @transform_3(%arg0: i32) -> (i32, i32) {
    %c0_i32 = arith.constant 0 : i32
    %c0_i32_0 = arith.constant 0 : i32
    return %arg0, %c0_i32 : i32, i32
  }
  func.func @transform_4(%arg0: i32) -> (i32, i32) {
    %c0_i32 = arith.constant 0 : i32
    %c0_i32_0 = arith.constant 0 : i32
    return %arg0, %c0_i32 : i32, i32
  }
}

</mosaic_0001>

<bundles_post_ra>
// kernel: tpu_custom_call.1
= control target key start
LH: loop header
LB: loop body
LE: loop exit
PB: predicated region body
PF: predicated region fallthrough
CT: control target
= control target key end

     0   :  { %10 = vsyncpa [#allocation3], 0  ;;  %s1315_s0 = inlined_call_operand.hbm [shape: f32[64,256], index: 0, kind: input, shape index: {}]   ;;  %s1316_s1 = inlined_call_operand.hbm [shape: bf16[256,128], index: 1, kind: input, shape index: {}]   ;;  %s1317_s2 = inlined_call_operand.vmem [shape: f32[1,256], index: 2, kind: input, shape index: {}]   ;;  %s1318_s3 = inlined_call_operand.hbm [shape: f32[64,128], index: 3, kind: output, shape index: {0}]   ;;  %s1319_s4 = inlined_call_operand.hbm [shape: f32[64,256], index: 4, kind: output, shape index: {1}]  }
   0x1   :  { %12 = vsyncpa [#allocation3 + $0x1], 0 }
   0x2   :  { %13 = vsyncpa [#allocation6], 0 }
   0x3   :  { %14 = vsyncpa [#allocation4], 0 }
   0x4   :  { %16 = vsyncpa [#allocation4 + $0x1], 0 }
   0x5   :  { %17 = vsyncpa [#allocation9], 0 }
   0x6   :  { %19 = vsyncpa [#allocation9 + $0x1], 0  ;;  %s1053_s15 = smov 0   ;;  %s1055_s16 = smov 0  }
   0x7   :  { %s1057_s17 = smov 0   ;;  %s1059_s18 = smov 0  }
   0x8 LB: > { %s1074_s19 = sadd.s32 4294967295, %s1014_s18   ;;  %s586_s20 = sadd.s32 4294967294, %s1014_s18   ;;  %s1014_s18 = sphi %s1059_s18, %s1339_s18   ;;  %s1010_s17 = sphi %s1057_s17, %s1338_s17   ;;  %s1006_s16 = sphi %s1055_s16, %s1337_s16   ;;  %s1002_s15 = sphi %s1053_s15, %s1336_s15  }
   0x9   : > { %p45_p0 = scmp.ne.s32.totalorder %s1006_s16, %s1002_s15  ;;  %p1320_p1 = scmp.eq.s32.totalorder %s1074_s19, 0 }
   0xa   : > { %p117_p3 = scmp.eq.s32.totalorder %s586_s20, 1  ;;  %p587_p5 = scmp.ge.s32.totalorder %s1014_s18, 1 }
   0xb   : > { %p1083_p4 = por %p1320_p1, %p45_p0  ;;  %p150_p7 = scmp.lt.s32.totalorder %s1014_s18, 3 }
   0xc   : > { %p1088_p6 = por %p117_p3, %p45_p0  ;;  %s1016_s24 = smov [#allocation5]  }
   0xd   : > { %s1323_s21 = scalar_select %p1083_p4, 1, 0 }
   0xe   : > { %s1324_s22 = scalar_select %p1088_p6, 1, 0 }
   0xf   : > { %p1093_p8 = pnand %p587_p5, %p150_p7  ;;  %s162_s25 = sshll.u32 %s1016_s24, 4  ;;  %s1097_s25 = int_to_ptr.vmem [resolvable:$true] %s162_s25 }
  0x10   : > { %s1109_s27 = sadd.s32 1, %s1014_s18   ;;  %s32_s28 = sadd.s32 1, %s1010_s17 }
  0x11   : > { %s1325_s23 = scalar_select %p1093_p8, 1, 0 }
  0x12   : > { %p794_p9 = pneg %p1093_p8  ;;  %s29_s29 = ssub.s32 %s1014_s18, %s1109_s27 }
  0x13   : > { %s854_s6 = scalar_lea.hbm %s1316_s1, 2048 }
  0x14   : > { %p1104_p11 = pnand %p794_p9, %p1320_p1  ;;  %p855_p12 = scmp.ne.s32.totalorder %s1316_s1, %s854_s6 }
  0x15   : > { %p861_p5 = scmp.lt.u32.totalorder %s854_s6, %s1316_s1 }
  0x16   : > { %p856_p13 = pneg %p1104_p11 }
  0x18   : > { %p857_p0 = pnand %p856_p13, %p855_p12 }
  0x1a   : > { %p858_p3 = pneg %p857_p0 }
  0x1c   : > { %p863_p7 = pnand %p861_p5, %p858_p3 }
  0x1e   : > { %866 = shalt.err (!%p863_p7)
}
  0x1f   : > { %s867_s11 = scalar_lea.vmem %s1097_s25, 2048  ;;  %p875_p2 = scmp.lt.s32.totalorder %s1097_s25, %s1097_s25 }
  0x20   : > { %p868_p9 = scmp.ne.s32.totalorder %s1097_s25, %s867_s11  ;;  %p876_p6 = scmp.lt.s32.totalorder %s867_s11, %s867_s11 }
  0x22   : > { %p870_p10 = pnand %p868_p9, %p856_p13  ;;  %p877_p4 = por %p876_p6, %p875_p2 }
  0x24   : > { %p871_p1 = pneg %p870_p10 }
  0x26   : > { %p878_p8 = pnand %p877_p4, %p871_p1 }
  0x28   : > { %881 = shalt.err (!%p878_p8)
}
  0x29   : > { %s1017_s12 = smov 64   ;;  %s1018_s13 = smov 4  }
  0x2a   : > { %797 = dma.hbm_to_vmem [thread:$0]  (!%p1104_p11), %s1316_s1, 2048, %s1097_s25, [#allocation6], %s1017_s12, %s1017_s12, %s1018_s13  }
  0x2b   : > { %p30_p2 = scmp.eq.s32.totalorder %s29_s29, 0  ;;  %p39_p1 = scmp.ne.s32.totalorder %s1010_s17, %s1006_s16 }
  0x2c   : > { %p40_p4 = scmp.eq.s32.totalorder %s1014_s18, 0  ;;  %p810_p6 = scmp.lt.s32.totalorder %s1014_s18, 2 }
  0x2d   : > { %s1140_s24 = scalar_select %p30_p2, %s1010_s17, %s32_s28  }
  0x2e   : > { %p41_p8 = por %p40_p4, %p39_p1  ;;  %p1327_p10 = scmp.eq.s32.totalorder %s1074_s19, 1 }
  0x2f   : > { %s179_s5 = sand.u32 1, %s1010_s17   ;;  %s609_s6 = sshll.u32 %s1014_s18, 10 }
  0x30   : > { %p1144_p12 = por %p1327_p10, %p39_p1  ;;  %s590_s7 = sshll.u32 %s179_s5, 6 }
  0x31   : > { %s1153_s9 = scalar_lea.hbm %s1315_s0, %s609_s6  ;;  %s183_s25 = scalar_lea.vmem [#allocation2], %s590_s7 }
  0x32   : > { %s191_s28 = sshll.u32 %s183_s25, 4  ;;  %p1155_p11 = pnand %p810_p6, %p41_p8  ;;  %s1159_s28 = int_to_ptr.vmem [resolvable:$true] %s191_s28 }
  0x33   : > { %s1161_s10 = scalar_lea.sflag [#allocation3], %s179_s5  ;;  %s882_s11 = scalar_lea.hbm %s1153_s9, 1024 }
  0x34   : > { %p883_p13 = scmp.ne.s32.totalorder %s1153_s9, %s882_s11  ;;  %p884_p0 = pneg %p1155_p11 }
  0x35   : > { %s887_s14 = scalar_lea.hbm %s1315_s0, 2048  ;;  %p888_p7 = scmp.lt.u32.totalorder %s1153_s9, %s1315_s0 }
  0x36   : > { %p885_p3 = pnand %p884_p0, %p883_p13  ;;  %p889_p9 = scmp.lt.u32.totalorder %s887_s14, %s882_s11 }
  0x37   : > { %p891_p1 = scmp.lt.u32.totalorder %s882_s11, %s1153_s9 }
  0x38   : > { %p886_p5 = pneg %p885_p3  ;;  %p890_p2 = por %p889_p9, %p888_p7 }
  0x3a   : > { %p892_p4 = por %p891_p1, %p890_p2 }
  0x3c   : > { %p893_p6 = pnand %p892_p4, %p886_p5 }
  0x3e   : > { %896 = shalt.err (!%p893_p6)
}
  0x3f   : > { %s897_s5 = scalar_lea.vmem %s1159_s28, 1024  ;;  %s1019_s7 = smov [#allocation2]  }
  0x40   : > { %p898_p8 = scmp.ne.s32.totalorder %s1159_s28, %s897_s5  ;;  %s902_s26 = sshll.u32 %s1019_s7, 4  ;;  %s903_s26 = int_to_ptr.vmem [resolvable:$false] %s902_s26 }
  0x41   : > { %s904_s8 = scalar_lea.vmem %s903_s26, 2048  ;;  %p905_p3 = scmp.lt.s32.totalorder %s1159_s28, %s903_s26 }
  0x42   : > { %p900_p10 = pnand %p898_p8, %p884_p0  ;;  %p906_p7 = scmp.lt.s32.totalorder %s904_s8, %s897_s5 }
  0x44   : > { %p901_p13 = pneg %p900_p10  ;;  %p907_p9 = por %p906_p7, %p905_p3 }
  0x46   : > { %p908_p2 = pnand %p907_p9, %p901_p13 }
  0x48   : > { %911 = shalt.err (!%p908_p2)
}
  0x49   : > { %s1020_s25 = smov 256   ;;  %s1021_s11 = smov 16  }
  0x4a   : > { %801 = dma.hbm_to_vmem [thread:$0]  (!%p1155_p11), %s1153_s9, 1024, %s1159_s28, %s1161_s10, %s1020_s25, %s1020_s25, %s1021_s11  }
  0x4b   : > { %p1330_p0 = scmp.ne.s32.totalorder %s1325_s23, 0 }
  0x4c   : > { %s1192_s12 = sand.u32 (!%p1330_p0), 1, %s1006_s16   ;;  %p1331_p5 = scmp.ne.s32.totalorder (!%p1330_p0), %s1323_s21, 0 }
  0x4d   : > { %203 = sbr.rel (%p1330_p0) target bundleno = 355 (0x163), region = 32  ;;  %s595_s13 = sshll.u32 (!%p1330_p0), %s1192_s12, 6 }
  0x4e   : > { %s206_s14 = scalar_lea.sflag (!%p1330_p0), [#allocation3], %s1192_s12  ;;  %s1198_s20 = scalar_lea.vmem (!%p1330_p0), [#allocation2], %s595_s13 }
  0x54   : > { %985 = dma.done.wait (%p1331_p5), %s206_s14, 1024  }
  0x55   : > { %987 = vsyncadd (%p1331_p5), %s206_s14, 4294966272  ;;  %p1332_p11 = scmp.eq.s32.totalorder %s1074_s19, 0 }
  0x57   : > { %989 = dma.done.wait (%p1332_p11), [#allocation6], 2048   ;;  %p1333_p1 = pmov %p1332_p11 }
  0x58   : > { %v409_v0 = vlaneseq  ;;  %v684_v2 = vld [vmem:[#allocation5 + $0x40] sm:$0xff]   ;;  %v685_v4 = vld [vmem:[#allocation5 + $0x48] sm:$0xff]   ;;  %v686_v8 = vld [vmem:[#allocation5 + $0x50] sm:$0xff]   ;;  %s1221_s9 = scalar_lea.vmem [#allocation8], %s595_s13  ;;  %s612_s29 = sshll.u32 %s1074_s19, 10 }
  0x59   : > { %991 = vsyncadd (%p1333_p1), [#allocation6], 4294965248  ;;  %v614_v3 = vld [vmem:[#allocation5] sm:$0xff]   ;;  %737 = vmatprep.subr.bf16.mxu0 %v684_v2  ;;  %768 = vmatprep.subr.bf16.mxu1 %v684_v2  ;;  %v677_v7 = vld [vmem:[#allocation5 + $0x8] sm:$0xff]   ;;  %s471_s28 = sshll.u32 %s1221_s9, 4  ;;  %s1238_s5 = scalar_lea.hbm %s1319_s4, %s612_s29  ;;  %s1233_s28 = int_to_ptr.vmem [resolvable:$true] %s471_s28 }
  0x5a   : > { %v410_v1 = vshrl.u32 %v409_v0, 7  ;;  %739 = vmatpush3.bf16.msra.mxu0 %v614_v3  ;;  %776 = vmatpush3.bf16.msra.mxu1 %v614_v3  ;;  %v247_v9 = vld [vmem:[%s1198_s20 + $0x8] sm:$0xff]  ;;  %v407_v10 = vld [vmem:[%s1317_s2] sm:$0x3]  ;;  %v678_v11 = vld [vmem:[#allocation5 + $0x10] sm:$0xff]   ;;  %s441_s7 = scalar_lea.sflag [#allocation9], %s1192_s12 }
  0x5b   : > { %741 = vmatprep.subr.bf16.mxu0 %v685_v4  ;;  %769 = vmatprep.subr.bf16.mxu1 %v685_v4  ;;  %v251_v13 = vld [vmem:[%s1198_s20 + $0x28] sm:$0xff]  ;;  %v687_v15 = vld [vmem:[#allocation5 + $0x58] sm:$0xff]   ;;  %v246_v16 = vld [vmem:[%s1198_s20] sm:$0xff]  ;;  %s912_s26 = scalar_lea.vmem %s1233_s28, 1024  ;;  %s1022_s8 = smov [#allocation8]  }
  0x5c   : > { %v415_v5 = vsub.s32 1, %v410_v1  ;;  %v411_v6 = vsub.s32 0, %v410_v1  ;;  %v250_v17 = vld [vmem:[%s1198_s20 + $0x20] sm:$0xff]  ;;  %382 = vmatprep.mubr.f32.mxu0 %v247_v9  ;;  %392 = vmatprep.mubr.f32.mxu1 %v251_v13  ;;  %v249_v21 = vld [vmem:[%s1198_s20 + $0x18] sm:$0xff]  ;;  %v248_v23 = vld [vmem:[%s1198_s20 + $0x10] sm:$0xff]  ;;  %p913_p4 = scmp.ne.s32.totalorder %s1233_s28, %s912_s26  ;;  %s916_s25 = sshll.u32 %s1022_s8, 4  ;;  %s917_s25 = int_to_ptr.vmem [resolvable:$false] %s916_s25 }
  0x5d   : > { %v253_v22 = vld [vmem:[%s1198_s20 + $0x38] sm:$0xff]  ;;  %v252_v28 = vld [vmem:[%s1198_s20 + $0x30] sm:$0xff]  ;;  %v688_v31 = vld [vmem:[#allocation5 + $0x60] sm:$0xff]   ;;  %s918_s11 = scalar_lea.vmem %s917_s25, 2048  ;;  %p919_p10 = scmp.lt.s32.totalorder %s1233_s28, %s917_s25 }
  0x5e   : > { %743 = vmatpush3.bf16.msra.mxu0 %v677_v7  ;;  %777 = vmatpush3.bf16.msra.mxu1 %v677_v7  ;;  %v416_v12 = vrot.slane %v407_v10, %v415_v5  ;;  %v412_v14 = vrot.slane %v407_v10, %v411_v6  ;;  %v679_v30 = vld [vmem:[#allocation5 + $0x18] sm:$0xff]   ;;  %v680_v32 = vld [vmem:[#allocation5 + $0x20] sm:$0xff]   ;;  %v689_v33 = vld [vmem:[#allocation5 + $0x68] sm:$0xff]   ;;  %p914_p6 = pnand %p913_p4, %p1144_p12  ;;  %p920_p13 = scmp.lt.s32.totalorder %s918_s11, %s912_s26 }
  0x5f   : > { %745 = vmatprep.subr.bf16.mxu0 %v686_v8  ;;  %770 = vmatprep.subr.bf16.mxu1 %v686_v8  ;;  %v681_v34 = vld [vmem:[#allocation5 + $0x28] sm:$0xff]   ;;  %v690_v35 = vld [vmem:[#allocation5 + $0x70] sm:$0xff]   ;;  %v691_v37 = vld [vmem:[#allocation5 + $0x78] sm:$0xff]  }
  0x60   : > { %v420_v18 = vmul.f32 %v416_v12, %v247_v9  ;;  %v424_v19 = vmul.f32 %v416_v12, %v251_v13  ;;  %v419_v20 = vmul.f32 %v412_v14, %v246_v16  ;;  %v423_v24 = vmul.f32 %v412_v14, %v250_v17  ;;  %v682_v36 = vld [vmem:[#allocation5 + $0x30] sm:$0xff]   ;;  %v683_v38 = vld [vmem:[#allocation5 + $0x38] sm:$0xff]   ;;  %p915_p8 = pneg %p914_p6  ;;  %p921_p3 = por %p920_p13, %p919_p10 }
  0x61   : > { %v422_v25 = vmul.f32 %v416_v12, %v249_v21  ;;  %v426_v26 = vmul.f32 %v416_v12, %v253_v22  ;;  %v421_v27 = vmul.f32 %v412_v14, %v248_v23  ;;  %v425_v29 = vmul.f32 %v412_v14, %v252_v28 }
  0x62   : > { %747 = vmatpush3.bf16.msra.mxu0 %v678_v11  ;;  %778 = vmatpush3.bf16.msra.mxu1 %v678_v11  ;;  %428 = vst [vmem:[%s1221_s9 + $0x8] sm:$0xff] %v420_v18  ;;  %432 = vst [vmem:[%s1221_s9 + $0x28] sm:$0xff] %v424_v19  ;;  %p922_p7 = pnand %p921_p3, %p915_p8 }
  0x63   : > { %427 = vst [vmem:[%s1221_s9] sm:$0xff] %v419_v20  ;;  %749 = vmatprep.subr.bf16.mxu0 %v687_v15  ;;  %771 = vmatprep.subr.bf16.mxu1 %v687_v15  ;;  %431 = vst [vmem:[%s1221_s9 + $0x20] sm:$0xff] %v423_v24 }
  0x64   : > { %430 = vst [vmem:[%s1221_s9 + $0x18] sm:$0xff] %v422_v25  ;;  %434 = vst [vmem:[%s1221_s9 + $0x38] sm:$0xff] %v426_v26 }
  0x65   : > { %429 = vst [vmem:[%s1221_s9 + $0x10] sm:$0xff] %v421_v27  ;;  %433 = vst [vmem:[%s1221_s9 + $0x30] sm:$0xff] %v425_v29 }
  0x66   : > { %751 = vmatpush3.bf16.msra.mxu0 %v679_v30  ;;  %779 = vmatpush3.bf16.msra.mxu1 %v679_v30 }
  0x67   : > { %753 = vmatprep.subr.bf16.mxu0 %v688_v31  ;;  %772 = vmatprep.subr.bf16.mxu1 %v688_v31 }
  0x6a   : > { %755 = vmatpush3.bf16.msra.mxu0 %v680_v32  ;;  %780 = vmatpush3.bf16.msra.mxu1 %v680_v32 }
  0x6b   : > { %757 = vmatprep.subr.bf16.mxu0 %v689_v33  ;;  %773 = vmatprep.subr.bf16.mxu1 %v689_v33 }
  0x6e   : > { %759 = vmatpush3.bf16.msra.mxu0 %v681_v34  ;;  %781 = vmatpush3.bf16.msra.mxu1 %v681_v34 }
  0x6f   : > { %761 = vmatprep.subr.bf16.mxu0 %v690_v35  ;;  %774 = vmatprep.subr.bf16.mxu1 %v690_v35 }
  0x72   : > { %763 = vmatpush3.bf16.msra.mxu0 %v682_v36  ;;  %782 = vmatpush3.bf16.msra.mxu1 %v682_v36 }
  0x73   : > { %765 = vmatprep.subr.bf16.mxu0 %v691_v37  ;;  %775 = vmatprep.subr.bf16.mxu1 %v691_v37 }
  0x76   : > { %767 = vmatpush3.bf16.msra.mxu0 %v683_v38  ;;  %783 = vmatpush3.bf16.msra.mxu1 %v683_v38 }
  0x79   : > { %383 = vmatmul.mubr.f32.vlgmr.msra.gmra.mrb[0].mxu0 %v246_v16  ;;  %393 = vmatmul.mubr.f32.vlgmr.msra.gmra.mrb[0].mxu1 %v250_v17 }
  0x7a   : > { %387 = vmatprep.mubr.f32.mxu0 %v249_v21  ;;  %397 = vmatprep.mubr.f32.mxu1 %v253_v22 }
  0x7d   : > { %388 = vmatmul.mubr.f32.gmra.mrb[2].mxu0 %v248_v23  ;;  %398 = vmatmul.mubr.f32.gmra.mrb[2].mxu1 %v252_v28 }
  0x7e   : > { %925 = shalt.err (!%p922_p7)
}
  0x7f   : > { %s926_s13 = scalar_lea.hbm %s1238_s5, 1024  ;;  %s930_s21 = scalar_lea.hbm %s1319_s4, 2048 }
  0x80   : > { %p927_p9 = scmp.ne.s32.totalorder %s1238_s5, %s926_s13  ;;  %p931_p5 = scmp.lt.u32.totalorder %s1238_s5, %s1319_s4 }
  0x81   : > { %p932_p11 = scmp.lt.u32.totalorder %s930_s21, %s926_s13  ;;  %p934_p4 = scmp.lt.u32.totalorder %s926_s13, %s1238_s5 }
  0x82   : > { %p928_p2 = pnand %p927_p9, %p1144_p12 }
  0x83   : > { %p933_p1 = por %p932_p11, %p931_p5 }
  0x84   : > { %p929_p0 = pneg %p928_p2 }
  0x85   : > { %p935_p6 = por %p934_p4, %p933_p1 }
  0x87   : > { %p936_p8 = pnand %p935_p6, %p929_p0 }
  0x89   : > { %939 = shalt.err (!%p936_p8)
}
  0x8a   : > { %s1023_s29 = smov 256   ;;  %s1024_s10 = smov 16  }
  0x8b   : > { %791 = dma.vmem_to_hbm [thread:$0]  (%p1144_p12), %s1233_s28, 1024, %s1238_s5, %s441_s7, %s1023_s29, %s1023_s29, %s1024_s10  }
  0x8c   : > { %s597_s6 = sshll.u32 %s1192_s12, 5  ;;  %s610_s25 = sshll.u32 %s1074_s19, 9 }
  0x8d   : > { %s235_s26 = scalar_lea.vmem [#allocation7], %s597_s6  ;;  %s1271_s7 = scalar_lea.hbm %s1318_s3, %s610_s25 }
  0x8e   : > { %s454_s8 = sshll.u32 %s235_s26, 4  ;;  %s436_s19 = scalar_lea.sflag [#allocation4], %s1192_s12  ;;  %s1266_s8 = int_to_ptr.vmem [resolvable:$true] %s454_s8 }
  0x8f   : > { %s940_s11 = scalar_lea.vmem %s1266_s8, 512  ;;  %s1025_s13 = smov [#allocation7]  }
  0x90   : > { %p941_p10 = scmp.ne.s32.totalorder %s1266_s8, %s940_s11  ;;  %s944_s14 = sshll.u32 %s1025_s13, 4  ;;  %s945_s14 = int_to_ptr.vmem [resolvable:$false] %s944_s14 }
  0x91   : > { %s946_s20 = scalar_lea.vmem %s945_s14, 1024  ;;  %p947_p7 = scmp.lt.s32.totalorder %s1266_s8, %s945_s14 }
  0x92   : > { %p942_p13 = pnand %p941_p10, %p1144_p12  ;;  %p948_p9 = scmp.lt.s32.totalorder %s946_s20, %s940_s11 }
  0x94   : > { %p943_p3 = pneg %p942_p13  ;;  %p949_p2 = por %p948_p9, %p947_p7 }
  0x96   : > { %p950_p0 = pnand %p949_p2, %p943_p3 }
 0x14c   : > { %v724_v39 = vpop.f32.mrb[0].mxu0  ;;  %v730_v40 = vpop.f32.mrb[0].mxu1 }
 0x14d   : > { %v725_v41 = vpop.f32.mrb[1].mxu0  ;;  %v731_v42 = vpop.f32.mrb[1].mxu1 }
 0x14e   : > { %v726_v43 = vadd.f32 %v725_v41, %v724_v39  ;;  %v732_v44 = vadd.f32 %v731_v42, %v730_v40 }
 0x150   : > { %403 = vst [vmem:[%s235_s26] sm:$0xff] %v726_v43  ;;  %405 = vst [vmem:[%s235_s26 + $0x10] sm:$0xff] %v732_v44  ;;  %v727_v45 = vpop.f32.mrb[2].mxu0  ;;  %v733_v46 = vpop.f32.mrb[2].mxu1 }
 0x151   : > { %v728_v47 = vpop.f32.mrb[3].mxu0  ;;  %v734_v48 = vpop.f32.mrb[3].mxu1 }
 0x152   : > { %v729_v49 = vadd.f32 %v728_v47, %v727_v45  ;;  %v735_v50 = vadd.f32 %v734_v48, %v733_v46 }
 0x154   : > { %404 = vst [vmem:[%s235_s26 + $0x8] sm:$0xff] %v729_v49  ;;  %406 = vst [vmem:[%s235_s26 + $0x18] sm:$0xff] %v735_v50 }
 0x155   : > { %953 = shalt.err (!%p950_p0)
}
 0x156   : > { %s954_s21 = scalar_lea.hbm %s1271_s7, 512  ;;  %s958_s29 = scalar_lea.hbm %s1318_s3, 1024 }
 0x157   : > { %p955_p5 = scmp.ne.s32.totalorder %s1271_s7, %s954_s21  ;;  %p959_p4 = scmp.lt.u32.totalorder %s1271_s7, %s1318_s3 }
 0x158   : > { %p960_p6 = scmp.lt.u32.totalorder %s958_s29, %s954_s21  ;;  %p962_p10 = scmp.lt.u32.totalorder %s954_s21, %s1271_s7 }
 0x159   : > { %p956_p11 = pnand %p955_p5, %p1144_p12 }
 0x15a   : > { %p961_p8 = por %p960_p6, %p959_p4 }
 0x15b   : > { %p957_p1 = pneg %p956_p11 }
 0x15c   : > { %p963_p13 = por %p962_p10, %p961_p8 }
 0x15e   : > { %p964_p3 = pnand %p963_p13, %p957_p1 }
 0x160   : > { %967 = shalt.err (!%p964_p3)
}
 0x161   : > { %s1026_s26 = smov 128   ;;  %s1027_s25 = smov 8  }
 0x162   : > { %790 = dma.vmem_to_hbm [thread:$0]  (%p1144_p12), %s1266_s8, 512, %s1271_s7, %s436_s19, %s1026_s26, %s1026_s26, %s1027_s25  }
 0x163 PF: > { %s486_s28 = sand.u32 1, %s1002_s15   ;;  %p1334_p7 = scmp.ne.s32.totalorder %s1324_s22, 0 }
 0x164   : > { %p1335_p9 = scmp.ge.s32.totalorder %s1014_s18, 2  ;;  %s487_s5 = scalar_lea.sflag [#allocation4], %s486_s28 }
 0x166   : > { %p803_p2 = pnand %p1335_p9, %p1334_p7 }
 0x168   : > { %993 = dma.done.wait (!%p803_p2), %s487_s5, 512  }
 0x169   : > { %995 = vsyncadd (!%p803_p2), %s487_s5, 4294966784  ;;  %s496_s11 = scalar_lea.sflag [#allocation9], %s486_s28 }
 0x16a   : > { %997 = dma.done.wait (!%p803_p2), %s496_s11, 1024  }
 0x16b   : > { %999 = vsyncadd (!%p803_p2), %s496_s11, 4294966272  ;;  %p22_p12 = scmp.ge.s32.totalorder %s1109_s27, 4   ;;  %s1336_s15 = smov %s1006_s16 }
 0x16c   : > { %s1337_s16 = smov %s1010_s17  ;;  %s1338_s17 = smov %s1140_s24 }
 0x16d   : > { %s1339_s18 = smov %s1109_s27  ;;  %24 = sbr.rel (!%p22_p12) target bundleno = 8 (0x8), region = 98 }
 0x174   :  { %501 = vsyncpa [#allocation3], 1 }
 0x175   :  { %503 = vsyncpa [#allocation3 + $0x1], 1 }
 0x176   :  { %504 = vsyncpa [#allocation6], 1 }
 0x177   :  { %505 = vsyncpa [#allocation4], 1 }
 0x178   :  { %507 = vsyncpa [#allocation4 + $0x1], 1 }
 0x179   :  { %508 = vsyncpa [#allocation9], 1 }
 0x17a   :  { %510 = vsyncpa [#allocation9 + $0x1], 1 }

</bundles_post_ra>
